<compile_context>
chip_gen: v5e
topology: v5e:2x2
jax: 0.10.0
libtpu: 0.0.40
codegen_flags: <defaults>
</compile_context>

<pallas_src>
import functools

import jax
import jax.numpy as jnp
from jax.experimental import pallas as pl

BN_EPS = 1e-5
OUT_PAD = 128          # lane-dense output width (multiple of 128)


def _batchnorm_train(h, gamma, beta):
    # BatchNorm1d, training mode: per-batch mean, *biased* variance, eps=1e-5.
    mu = jnp.mean(h, axis=0, keepdims=True)
    xc = h - mu
    var = jnp.mean(xc * xc, axis=0, keepdims=True)
    scale = gamma * jax.lax.rsqrt(var + BN_EPS)   # rsqrt lowers to the EUP slot
    return xc * scale + beta


def mlp_kernel(x_ref, w1_ref, w2_ref, w3_ref, vec_ref, o_ref, *, hidden):
    x = x_ref[...]

    # Packed per-feature vectors: one (8, 128) tile, one DMA.
    vec = vec_ref[...]
    g1, be1 = vec[0:1, :hidden], vec[1:2, :hidden]
    g2, be2 = vec[2:3, :hidden], vec[3:4, :hidden]
    b3 = vec[4:5, :]                              # already padded to OUT_PAD lanes

    # ---- hidden layer 1: Linear -> BatchNorm1d -> ReLU ----
    # (Linear bias omitted: exactly cancelled by BN's batch-mean subtraction.)
    h = jnp.dot(x, w1_ref[...], preferred_element_type=jnp.float32)
    h = _batchnorm_train(h, g1, be1)
    h = jnp.maximum(h, 0.0)

    # ---- hidden layer 2: Linear -> BatchNorm1d -> Tanh ----
    h = jnp.dot(h, w2_ref[...], preferred_element_type=jnp.float32)
    h = _batchnorm_train(h, g2, be2)
    h = jnp.tanh(h)

    # ---- output layer: Linear (lane-dense, padded to OUT_PAD columns) ----
    o_ref[...] = (jnp.dot(h, w3_ref[...], preferred_element_type=jnp.float32)
                  + b3).astype(o_ref.dtype)


def prepare_params(p):
    """Wrapper-side packing: pad w3/b3 to OUT_PAD lanes, pack all (1,H) vectors
    into a single (8, OUT_PAD) tile. Done once, outside the kernel."""
    hidden = p["w1"].shape[1]
    out = p["w3"].shape[1]
    w3p = jnp.zeros((hidden, OUT_PAD), jnp.float32).at[:, :out].set(p["w3"])
    vec = jnp.zeros((8, OUT_PAD), jnp.float32)
    vec = vec.at[0, :hidden].set(p["g1"][0])
    vec = vec.at[1, :hidden].set(p["be1"][0])
    vec = vec.at[2, :hidden].set(p["g2"][0])
    vec = vec.at[3, :hidden].set(p["be2"][0])
    vec = vec.at[4, :out].set(p["b3"][0])
    return p["w1"], p["w2"], w3p, vec


@functools.partial(jax.jit, static_argnames=("out_size",))
def neural_net_forward(x, w1, w2, w3p, vec, *, out_size):
    """x: [B, input_size] f32.  w1:[in,H]  w2:[H,H]  w3p:[H,OUT_PAD]  vec:[8,OUT_PAD]."""
    B = x.shape[0]
    hidden = w1.shape[1]

    operands = (x, w1, w2, w3p, vec)
    # Everything is tiny -> single grid point, all operands resident in VMEM.
    in_specs = [pl.BlockSpec(op.shape, lambda *a, nd=op.ndim: (0,) * nd)
                for op in operands]
    out_spec = pl.BlockSpec((B, OUT_PAD), lambda: (0, 0))

    out_padded = pl.pallas_call(
        functools.partial(mlp_kernel, hidden=hidden),
        out_shape=jax.ShapeDtypeStruct((B, OUT_PAD), jnp.float32),
        grid=(),
        in_specs=in_specs,
        out_specs=out_spec,
    )(*operands)
    return out_padded[:, :out_size]


def init_params(key, input_size, hidden_size, output_size):
    """Deterministic synthetic parameters (PyTorch Linear weight is [out,in];
    we store the transposed [in,out] version)."""
    ks = jax.random.split(key, 6)
    scale = 0.1
    return {
        "w1": scale * jax.random.normal(ks[0], (input_size, hidden_size), jnp.float32),
        "b1": scale * jax.random.normal(ks[1], (1, hidden_size), jnp.float32),
        "g1": jnp.ones((1, hidden_size), jnp.float32),
        "be1": jnp.zeros((1, hidden_size), jnp.float32),
        "w2": scale * jax.random.normal(ks[2], (hidden_size, hidden_size), jnp.float32),
        "b2": scale * jax.random.normal(ks[3], (1, hidden_size), jnp.float32),
        "g2": jnp.ones((1, hidden_size), jnp.float32),
        "be2": jnp.zeros((1, hidden_size), jnp.float32),
        "w3": scale * jax.random.normal(ks[4], (hidden_size, output_size), jnp.float32),
        "b3": scale * jax.random.normal(ks[5], (1, output_size), jnp.float32),
    }


def _bn_ref(h, gamma, beta):
    mu = jnp.mean(h, axis=0, keepdims=True)
    var = jnp.mean((h - mu) * (h - mu), axis=0, keepdims=True)
    return (h - mu) * jax.lax.rsqrt(var + BN_EPS) * gamma + beta


def reference_forward(x, p):
    """Pure-JAX reference mirroring the PyTorch forward exactly (including the
    Linear biases that BN renders inert)."""
    h = x @ p["w1"] + p["b1"]
    h = _bn_ref(h, p["g1"], p["be1"])
    h = jnp.maximum(h, 0.0)
    h = h @ p["w2"] + p["b2"]
    h = _bn_ref(h, p["g2"], p["be2"])
    h = jnp.tanh(h)
    return h @ p["w3"] + p["b3"]


if __name__ == "__main__":
    key = jax.random.PRNGKey(0)
    k_x, k_p = jax.random.split(key)

    batch, input_size, hidden_size, output_size = 8, 16, 32, 8
    x = jax.random.normal(k_x, (batch, input_size), jnp.float32)
    params = init_params(k_p, input_size, hidden_size, output_size)

    w1, w2, w3p, vec = prepare_params(params)
    out = neural_net_forward(x, w1, w2, w3p, vec, out_size=output_size)
    jax.block_until_ready(out)

    ref = reference_forward(x, params)
    assert out.shape == (batch, output_size)
    assert jnp.allclose(out, ref, atol=1e-4, rtol=1e-4), "mismatch vs reference"

    print("KERNEL_OK")
</pallas_src>

<mosaic_0001>
module attributes {stable_mosaic.version = 11 : i64} {
  func.func @mlp_kernel(%arg0: memref<8x16xf32, #tpu.memory_space<vmem>>, %arg1: memref<16x32xf32, #tpu.memory_space<vmem>>, %arg2: memref<32x32xf32, #tpu.memory_space<vmem>>, %arg3: memref<32x128xf32, #tpu.memory_space<vmem>>, %arg4: memref<8x128xf32, #tpu.memory_space<vmem>>, %arg5: memref<8x128xf32, #tpu.memory_space<vmem>>) attributes {dimension_semantics = [], scalar_prefetch = 0 : i64, scratch_operands = 0 : i64, tpu.core_type = #tpu.core_type<tc>} {
    %c0 = arith.constant 0 : index
    %c0_0 = arith.constant 0 : index
    %0 = vector.load %arg0[%c0, %c0_0] : memref<8x16xf32, #tpu.memory_space<vmem>>, vector<8x16xf32>
    %c0_1 = arith.constant 0 : index
    %c0_2 = arith.constant 0 : index
    %1 = vector.load %arg4[%c0_1, %c0_2] : memref<8x128xf32, #tpu.memory_space<vmem>>, vector<8x128xf32>
    %2 = vector.extract_strided_slice %1 {offsets = [0, 0], sizes = [1, 32], strides = [1, 1]} : vector<8x128xf32> to vector<1x32xf32>
    %3 = vector.extract_strided_slice %1 {offsets = [1, 0], sizes = [1, 32], strides = [1, 1]} : vector<8x128xf32> to vector<1x32xf32>
    %4 = vector.extract_strided_slice %1 {offsets = [2, 0], sizes = [1, 32], strides = [1, 1]} : vector<8x128xf32> to vector<1x32xf32>
    %5 = vector.extract_strided_slice %1 {offsets = [3, 0], sizes = [1, 32], strides = [1, 1]} : vector<8x128xf32> to vector<1x32xf32>
    %6 = vector.extract_strided_slice %1 {offsets = [4, 0], sizes = [1, 128], strides = [1, 1]} : vector<8x128xf32> to vector<1x128xf32>
    %c0_3 = arith.constant 0 : index
    %c0_4 = arith.constant 0 : index
    %7 = vector.load %arg1[%c0_3, %c0_4] : memref<16x32xf32, #tpu.memory_space<vmem>>, vector<16x32xf32>
    %cst = arith.constant dense<0.000000e+00> : vector<8x32xf32>
    %8 = tpu.matmul %0, %7, %cst {dimension_numbers = #tpu.dot_dimension_numbers<[1], [0], [0], [1], [0, 0, 1, 1], [], []>} : vector<8x16xf32>, vector<16x32xf32>, vector<8x32xf32> -> vector<8x32xf32>
    %cst_5 = arith.constant dense<0.000000e+00> : vector<32xf32>
    %9 = vector.multi_reduction <add>, %8, %cst_5 [0] : vector<8x32xf32> to vector<32xf32>
    %10 = vector.shape_cast %9 : vector<32xf32> to vector<1x32xf32>
    %cst_6 = arith.constant 8.000000e+00 : f32
    %11 = vector.broadcast %cst_6 : f32 to vector<1x32xf32>
    %12 = arith.divf %10, %11 : vector<1x32xf32>
    %13 = vector.broadcast %12 : vector<1x32xf32> to vector<8x32xf32>
    %14 = arith.subf %8, %13 : vector<8x32xf32>
    %15 = arith.mulf %14, %14 : vector<8x32xf32>
    %cst_7 = arith.constant dense<0.000000e+00> : vector<32xf32>
    %16 = vector.multi_reduction <add>, %15, %cst_7 [0] : vector<8x32xf32> to vector<32xf32>
    %17 = vector.shape_cast %16 : vector<32xf32> to vector<1x32xf32>
    %cst_8 = arith.constant 8.000000e+00 : f32
    %18 = vector.broadcast %cst_8 : f32 to vector<1x32xf32>
    %19 = arith.divf %17, %18 : vector<1x32xf32>
    %cst_9 = arith.constant 9.99999974E-6 : f32
    %20 = vector.broadcast %cst_9 : f32 to vector<1x32xf32>
    %21 = arith.addf %19, %20 : vector<1x32xf32>
    %22 = math.rsqrt %21 : vector<1x32xf32>
    %23 = arith.mulf %2, %22 : vector<1x32xf32>
    %24 = vector.broadcast %23 : vector<1x32xf32> to vector<8x32xf32>
    %25 = arith.mulf %14, %24 : vector<8x32xf32>
    %26 = vector.broadcast %3 : vector<1x32xf32> to vector<8x32xf32>
    %27 = arith.addf %25, %26 : vector<8x32xf32>
    %cst_10 = arith.constant 0.000000e+00 : f32
    %28 = vector.broadcast %cst_10 : f32 to vector<8x32xf32>
    %29 = arith.maximumf %27, %28 : vector<8x32xf32>
    %c0_11 = arith.constant 0 : index
    %c0_12 = arith.constant 0 : index
    %30 = vector.load %arg2[%c0_11, %c0_12] : memref<32x32xf32, #tpu.memory_space<vmem>>, vector<32x32xf32>
    %cst_13 = arith.constant dense<0.000000e+00> : vector<8x32xf32>
    %31 = tpu.matmul %29, %30, %cst_13 {dimension_numbers = #tpu.dot_dimension_numbers<[1], [0], [0], [1], [0, 0, 1, 1], [], []>} : vector<8x32xf32>, vector<32x32xf32>, vector<8x32xf32> -> vector<8x32xf32>
    %cst_14 = arith.constant dense<0.000000e+00> : vector<32xf32>
    %32 = vector.multi_reduction <add>, %31, %cst_14 [0] : vector<8x32xf32> to vector<32xf32>
    %33 = vector.shape_cast %32 : vector<32xf32> to vector<1x32xf32>
    %cst_15 = arith.constant 8.000000e+00 : f32
    %34 = vector.broadcast %cst_15 : f32 to vector<1x32xf32>
    %35 = arith.divf %33, %34 : vector<1x32xf32>
    %36 = vector.broadcast %35 : vector<1x32xf32> to vector<8x32xf32>
    %37 = arith.subf %31, %36 : vector<8x32xf32>
    %38 = arith.mulf %37, %37 : vector<8x32xf32>
    %cst_16 = arith.constant dense<0.000000e+00> : vector<32xf32>
    %39 = vector.multi_reduction <add>, %38, %cst_16 [0] : vector<8x32xf32> to vector<32xf32>
    %40 = vector.shape_cast %39 : vector<32xf32> to vector<1x32xf32>
    %cst_17 = arith.constant 8.000000e+00 : f32
    %41 = vector.broadcast %cst_17 : f32 to vector<1x32xf32>
    %42 = arith.divf %40, %41 : vector<1x32xf32>
    %cst_18 = arith.constant 9.99999974E-6 : f32
    %43 = vector.broadcast %cst_18 : f32 to vector<1x32xf32>
    %44 = arith.addf %42, %43 : vector<1x32xf32>
    %45 = math.rsqrt %44 : vector<1x32xf32>
    %46 = arith.mulf %4, %45 : vector<1x32xf32>
    %47 = vector.broadcast %46 : vector<1x32xf32> to vector<8x32xf32>
    %48 = arith.mulf %37, %47 : vector<8x32xf32>
    %49 = vector.broadcast %5 : vector<1x32xf32> to vector<8x32xf32>
    %50 = arith.addf %48, %49 : vector<8x32xf32>
    %51 = math.tanh %50 : vector<8x32xf32>
    %c0_19 = arith.constant 0 : index
    %c0_20 = arith.constant 0 : index
    %52 = vector.load %arg3[%c0_19, %c0_20] : memref<32x128xf32, #tpu.memory_space<vmem>>, vector<32x128xf32>
    %cst_21 = arith.constant dense<0.000000e+00> : vector<8x128xf32>
    %53 = tpu.matmul %51, %52, %cst_21 {dimension_numbers = #tpu.dot_dimension_numbers<[1], [0], [0], [1], [0, 0, 1, 1], [], []>} : vector<8x32xf32>, vector<32x128xf32>, vector<8x128xf32> -> vector<8x128xf32>
    %54 = vector.broadcast %6 : vector<1x128xf32> to vector<8x128xf32>
    %55 = arith.addf %53, %54 : vector<8x128xf32>
    %c0_22 = arith.constant 0 : index
    %c0_23 = arith.constant 0 : index
    %56 = vector.load %arg5[%c0_22, %c0_23] : memref<8x128xf32, #tpu.memory_space<vmem>>, vector<8x128xf32>
    tpu.vector_store %arg5[%c0_22, %c0_23], %55 {strides = array<i32>} : memref<8x128xf32, #tpu.memory_space<vmem>>, vector<8x128xf32>,
    return
  }
}

</mosaic_0001>

<bundles_post_ra>
// kernel: neural_net_forward.1
= control target key start
LH: loop header
LB: loop body
LE: loop exit
PB: predicated region body
PF: predicated region fallthrough
CT: control target
= control target key end

     0   :  { %10 = vsyncpa [#allocation3], 0  ;;  %s524_s0 = inlined_call_operand.hbm [shape: f32[8,16], index: 0, kind: input, shape index: {}]   ;;  %s525_s1 = inlined_call_operand.hbm [shape: f32[16,32], index: 1, kind: input, shape index: {}]   ;;  %s526_s2 = inlined_call_operand.hbm [shape: f32[32,32], index: 2, kind: input, shape index: {}]   ;;  %s527_s3 = inlined_call_operand.hbm [shape: f32[32,128], index: 3, kind: input, shape index: {}]   ;;  %s528_s4 = inlined_call_operand.hbm [shape: f32[8,128], index: 4, kind: input, shape index: {}]   ;;  %s529_s5 = inlined_call_operand.hbm [shape: f32[8,128], index: 5, kind: output, shape index: {}]  }
   0x1   :  { %11 = vsyncpa [#allocation6], 0 }
   0x2   :  { %12 = vsyncpa [#allocation9], 0  ;;  %s29_s20 = sshll.u32 %s525_s1, 4  ;;  %s30_s20 = int_to_ptr.hbm [resolvable:$true] %s29_s20 }
   0x3   :  { %13 = vsyncpa [#allocation4], 0  ;;  %s448_s21 = smov [#allocation5]   ;;  %s55_s25 = sshll.u32 %s527_s3, 4  ;;  %s56_s25 = int_to_ptr.hbm [resolvable:$true] %s55_s25 }
   0x4   :  { %s31_s22 = sshll.u32 %s448_s21, 4  ;;  %s449_s26 = smov 128   ;;  %s32_s22 = int_to_ptr.vmem [resolvable:$true] %s31_s22 }
   0x5   :  { %s450_s27 = smov 8   ;;  %s451_s28 = smov [#allocation8]  }
   0x6   :  { %37 = dma.hbm_to_vmem [thread:$0]  %s30_s20, 256, %s32_s22, [#allocation6], %s449_s26, %s449_s26, %s450_s27  }
   0x7   :  { %s57_s29 = sshll.u32 %s451_s28, 4  ;;  %s19_s7 = sshll.u32 %s524_s0, 4  ;;  %s58_s29 = int_to_ptr.vmem [resolvable:$true] %s57_s29  ;;  %s20_s7 = int_to_ptr.hbm [resolvable:$true] %s19_s7 }
   0x8   :  { %63 = dma.hbm_to_vmem [thread:$0]  %s56_s25, 512, %s58_s29, [#allocation9], %s449_s26, %s449_s26, %s450_s27  }
   0x9   :  { %s42_s9 = sshll.u32 %s526_s2, 4  ;;  %s452_s10 = smov [#allocation2]   ;;  %s43_s9 = int_to_ptr.hbm [resolvable:$true] %s42_s9 }
   0xa   :  { %s21_s11 = sshll.u32 %s452_s10, 4  ;;  %s453_s3 = smov [#allocation7]   ;;  %s22_s11 = int_to_ptr.vmem [resolvable:$true] %s21_s11 }
   0xb   :  { %24 = dma.hbm_to_vmem [thread:$0]  %s20_s7, 128, %s22_s11, [#allocation3]  }
   0xc   :  { %s44_s12 = sshll.u32 %s453_s3, 4  ;;  %s69_s15 = sshll.u32 %s528_s4, 4  ;;  %s45_s12 = int_to_ptr.vmem [resolvable:$true] %s44_s12  ;;  %s70_s15 = int_to_ptr.hbm [resolvable:$true] %s69_s15 }
   0xd   :  { %50 = dma.hbm_to_vmem [thread:$0]  %s43_s9, 512, %s45_s12, [#allocation6], %s449_s26, %s449_s26, %s450_s27  }
   0xe   :  { %s454_s0 = smov [#allocation10]  }
   0xf   :  { %s71_s16 = sshll.u32 %s454_s0, 4  ;;  %s72_s16 = int_to_ptr.vmem [resolvable:$true] %s71_s16 }
  0x10   :  { %74 = dma.hbm_to_vmem [thread:$0]  %s70_s15, 128, %s72_s16, [#allocation9]  }
  0x11   :  { %440 = dma.done.wait [#allocation3], 128  }
  0x12   :  { %441 = vsyncadd [#allocation3], 4294967168 }
  0x13   :  { %442 = dma.done.wait [#allocation6], 768  }
  0x14   :  { %443 = vsyncadd [#allocation6], 4294966528 }
  0x15   :  { %444 = dma.done.wait [#allocation9], 640  }
  0x16   :  { %445 = vsyncadd [#allocation9], 4294966656  ;;  %v98_v0 = vld [vmem:[#allocation5 + $0x8] sm:$0xff]  ;;  %v97_v1 = vld [vmem:[#allocation5] sm:$0xff]  ;;  %vm99_vm0 = vcmask 130048   ;;  %v455_v3 = vmov 8.0  }
  0x17   :  { %117 = vmatpush.msra.mxu0 %v98_v0  ;;  %v95_v2 = vld [vmem:[#allocation2] sm:$0xff]  ;;  %288 = vrcp.f32 %v455_v3  ;;  %vm123_vm1 = vcmask 261120   ;;  %v169_v25 = vld [vmem:[#allocation7 + $0x18] sm:$0xff]  ;;  %v168_v27 = vld [vmem:[#allocation7 + $0x10] sm:$0xff]  ;;  %s456_s2 = smov [#allocation11]   ;;  %s264_s19 = sshll.u32 %s529_s5, 4  ;;  %s265_s19 = int_to_ptr.hbm [resolvable:$true] %s264_s19 }
  0x18   :  { %185 = vmatpush.msra.mxu1 %v169_v25  ;;  %v167_v28 = vld [vmem:[#allocation7 + $0x8] sm:$0xff]  ;;  %v166_v30 = vld [vmem:[#allocation7] sm:$0xff]  ;;  %v230_v3 = vld [vmem:[#allocation8 + $0x10] sm:$0xff]  ;;  %s262_s4 = sshll.u32 %s456_s2, 4  ;;  %s263_s4 = int_to_ptr.vmem [resolvable:$true] %s262_s4 }
  0x19   :  { %118 = vmatpush.msra.mxu0 %v97_v1  ;;  %v508_v39 = vld [vmem:[#allocation10] sm:$0xff]  ;;  %v231_v1 = vld [vmem:[#allocation8 + $0x18] sm:$0xff] }
  0x1a   :  { %276 = vmatmul.msk.f32.vlgmr.msra.gmra.mxu0 %vm99_vm0, %v95_v2  ;;  %186 = vmatpush.msra.mxu1 %v168_v27  ;;  %v163_v44 = vperm.slane %v508_v39, 1 }
  0x1b   :  { %248 = vmatpush.msra.mxu2 %v231_v1 }
  0x1c   :  { %187 = vmatpush.msra.mxu1 %v167_v28 }
  0x1d   :  { %v289_v4 = vpop.eup %288  ;;  %249 = vmatpush.msra.mxu2 %v230_v3 }
  0x1e   :  { %v132_v5 = vmul.f32 8.0, %v289_v4  ;;  %vm136_vm2 = vweird.f32 %v289_v4  ;;  %188 = vmatpush.msra.mxu1 %v166_v30 }
  0x20   :  { %v133_v6 = vsub.f32 1.0, %v132_v5 }
  0x22   :  { %v134_v10 = vmul.f32 %v289_v4, %v133_v6  ;;  %v228_v6 = vld [vmem:[#allocation8] sm:$0xff] }
  0x24   :  { %v135_v13 = vadd.f32 %v289_v4, %v134_v10 }
  0x26   :  { %v503_v16 = vsel %vm136_vm2, %v289_v4, %v135_v13  ;;  %v229_v4 = vld [vmem:[#allocation8 + $0x8] sm:$0xff] }
  0x27   :  { %250 = vmatpush.msra.mxu2 %v229_v4 }
  0x29   :  { %251 = vmatpush.msra.mxu2 %v228_v6 }
  0x97   :  { %v120_v7 = vpop.f32.mrf.mxu0 }
  0x98   :  { %v124_v8 = vsel %vm123_vm1, %v120_v7, 0.0 }
  0x99   :  { %v125_v9 = vrot.slane %v124_v8, 4 }
  0x9b   :  { %v126_v11 = vadd.f32 %v125_v9, %v124_v8 }
  0x9d   :  { %v127_v12 = vrot.slane %v126_v11, 2 }
  0x9f   :  { %v128_v14 = vadd.f32 %v127_v12, %v126_v11 }
  0xa1   :  { %v129_v15 = vrot.slane %v128_v14, 1 }
  0xa3   :  { %v130_v17 = vadd.f32 %v129_v15, %v128_v14 }
  0xa5   :  { %v138_v18 = vmul.f32 %v503_v16, %v130_v17 }
  0xa7   :  { %v139_v19 = vsub.f32 %v120_v7, %v138_v18 }
  0xa9   :  { %v140_v20 = vmul.f32 %v139_v19, %v139_v19 }
  0xab   :  { %v141_v21 = vsel %vm123_vm1, %v140_v20, 0.0 }
  0xac   :  { %v142_v22 = vrot.slane %v141_v21, 4 }
  0xae   :  { %v143_v23 = vadd.f32 %v142_v22, %v141_v21  ;;  %v232_v21 = vperm.slane %v508_v39, 4 }
  0xb0   :  { %v144_v24 = vrot.slane %v143_v23, 2 }
  0xb2   :  { %v145_v26 = vadd.f32 %v144_v24, %v143_v23 }
  0xb4   :  { %v146_v29 = vrot.slane %v145_v26, 1 }
  0xb6   :  { %v147_v31 = vadd.f32 %v146_v29, %v145_v26 }
  0xb8   :  { %v148_v32 = vmul.f32 %v147_v31, %v503_v16 }
  0xba   :  { %v149_v33 = vadd.f32 1e-05, %v148_v32 }
  0xbc   :  { %290 = vrsqrt.f32 %v149_v33  ;;  %vm156_vm4 = vweird.f32 %v149_v33 }
  0xc2   :  { %v291_v34 = vpop.eup %290 }
  0xc3   :  { %v151_v35 = vmul.f32 %v291_v34, %v149_v33  ;;  %vm157_vm3 = vweird.f32 %v291_v34 }
  0xc4   :  { %vm158_vm5 = vmor %vm156_vm4, %vm157_vm3 }
  0xc5   :  { %v152_v36 = vmul.f32 %v291_v34, %v151_v35 }
  0xc7   :  { %v153_v37 = vmul.f32 0.5, %v152_v36 }
  0xc9   :  { %v154_v38 = vsub.f32 1.5, %v153_v37 }
  0xcb   :  { %v155_v40 = vmul.f32 %v291_v34, %v154_v38 }
  0xcd   :  { %v159_v41 = vsel %vm158_vm5, %v291_v34, %v155_v40 }
  0xce   :  { %v160_v42 = vmul.f32 %v159_v41, %v508_v39 }
  0xd0   :  { %v161_v43 = vperm.slane %v160_v42, 0 }
  0xd2   :  { %v162_v45 = vmul.f32 %v161_v43, %v139_v19 }
  0xd4   :  { %v164_v46 = vadd.f32 %v163_v44, %v162_v45 }
  0xd6   :  { %v165_v47 = vmax.f32 %v164_v46, 0.0 }
  0xd8   :  { %277 = vmatmul.msk.f32.vlgmr.msra.gmra.mxu1 %vm123_vm1, %v165_v47 }
 0x155   :  { %v190_v48 = vpop.f32.mrf.mxu1 }
 0x156   :  { %v193_v49 = vsel %vm123_vm1, %v190_v48, 0.0 }
 0x157   :  { %v194_v50 = vrot.slane %v193_v49, 4 }
 0x159   :  { %v195_v51 = vadd.f32 %v194_v50, %v193_v49 }
 0x15b   :  { %v196_v52 = vrot.slane %v195_v51, 2 }
 0x15d   :  { %v197_v53 = vadd.f32 %v196_v52, %v195_v51 }
 0x15f   :  { %v198_v54 = vrot.slane %v197_v53, 1 }
 0x161   :  { %v199_v55 = vadd.f32 %v198_v54, %v197_v53 }
 0x163   :  { %v200_v56 = vmul.f32 %v199_v55, %v503_v16 }
 0x165   :  { %v201_v57 = vsub.f32 %v190_v48, %v200_v56 }
 0x167   :  { %v202_v58 = vmul.f32 %v201_v57, %v201_v57 }
 0x169   :  { %v203_v59 = vsel %vm123_vm1, %v202_v58, 0.0 }
 0x16a   :  { %v204_v60 = vrot.slane %v203_v59, 4 }
 0x16c   :  { %v205_v61 = vadd.f32 %v204_v60, %v203_v59 }
 0x16e   :  { %v206_v62 = vrot.slane %v205_v61, 2 }
 0x170   :  { %v207_v63 = vadd.f32 %v206_v62, %v205_v61 }
 0x172   :  { %v208_v0 = vrot.slane %v207_v63, 1 }
 0x174   :  { %v209_v2 = vadd.f32 %v208_v0, %v207_v63 }
 0x176   :  { %v210_v5 = vmul.f32 %v209_v2, %v503_v16  ;;  %v225_v16 = vperm.slane %v508_v39, 3 }
 0x178   :  { %v211_v7 = vadd.f32 1e-05, %v210_v5 }
 0x17a   :  { %292 = vrsqrt.f32 %v211_v7  ;;  %vm218_vm7 = vweird.f32 %v211_v7 }
 0x180   :  { %v293_v8 = vpop.eup %292 }
 0x181   :  { %v213_v9 = vmul.f32 %v293_v8, %v211_v7  ;;  %vm219_vm6 = vweird.f32 %v293_v8 }
 0x182   :  { %vm220_vm8 = vmor %vm218_vm7, %vm219_vm6 }
 0x183   :  { %v214_v10 = vmul.f32 %v293_v8, %v213_v9 }
 0x185   :  { %v215_v11 = vmul.f32 0.5, %v214_v10 }
 0x187   :  { %v216_v12 = vsub.f32 1.5, %v215_v11 }
 0x189   :  { %v217_v13 = vmul.f32 %v293_v8, %v216_v12 }
 0x18b   :  { %v221_v14 = vsel %vm220_vm8, %v293_v8, %v217_v13 }
 0x18c   :  { %v222_v15 = vmul.f32 %v221_v14, %v508_v39 }
 0x18e   :  { %v223_v17 = vperm.slane %v222_v15, 2 }
 0x190   :  { %v224_v18 = vmul.f32 %v223_v17, %v201_v57 }
 0x192   :  { %v226_v19 = vadd.f32 %v225_v16, %v224_v18 }
 0x194   :  { %294 = vtanh.f32 %v226_v19 }
 0x19a   :  { %v295_v20 = vpop.eup %294 }
 0x19b   :  { %278 = vmatmul.msk.f32.vlgmr.msra.gmra.mxu2 %vm123_vm1, %v295_v20 }
 0x21e   :  { %v253_v22 = vpop.f32.mrf.mxu2 }
 0x21f   :  { %v254_v23 = vadd.f32 %v253_v22, %v232_v21 }
 0x221   :  { %256 = vst [vmem:[#allocation11] sm:$0xff] %v254_v23 }
 0x222   :  { %267 = dma.vmem_to_hbm [thread:$0]  %s263_s4, 128, %s265_s19, [#allocation4]  }
 0x223   :  { %446 = dma.done.wait [#allocation4], 128  }
 0x224   :  { %447 = vsyncadd [#allocation4], 4294967168 }
 0x225   :  { %272 = vsyncpa [#allocation3], 1 }
 0x226   :  { %273 = vsyncpa [#allocation6], 1 }
 0x227   :  { %274 = vsyncpa [#allocation9], 1 }
 0x228   :  { %275 = vsyncpa [#allocation4], 1 }

</bundles_post_ra>
